<compile_context>
chip_gen: v5e
topology: v5e:2x2
jax: 0.10.0
libtpu: 0.0.40
codegen_flags: <defaults>
</compile_context>

<pallas_src>
import jax
import jax.numpy as jnp
from jax.experimental import pallas as pl
from jax.experimental.pallas import tpu as pltpu

# ---- model hyper-parameters (small, consistent with the module) ----
VOCAB = 128          # vocab_size
MAX_SEQ = 128        # max_seq_length
EMBED = 32           # embed_size
BATCH = 2
SEQ = 8
DROPOUT_RATE = 0.0   # inference / rate 0.0 -> identity
LN_EPS = 1e-5

N_TOKENS = BATCH * SEQ
TABLE_ROWS = VOCAB + MAX_SEQ   # stacked [token_table; position_table]


def embedder_kernel(tok_ref, pos_ref, table_ref, gamma_ref, beta_ref, out_ref):
    tok = tok_ref[...]          # (N, 1) int32 token ids
    pos = pos_ref[...]          # (N, 1) int32 position ids

    # Fused token+position embedding lookup as ONE MXU contraction:
    # two-hot (N, VOCAB+MAX_SEQ) @ stacked_table (VOCAB+MAX_SEQ, E)
    #   == token_table[tok] + position_table[pos]
    col = jax.lax.broadcasted_iota(jnp.int32, (N_TOKENS, TABLE_ROWS), 1)
    two_hot = jnp.logical_or(col == tok, col == (VOCAB + pos)).astype(jnp.float32)
    x = jnp.dot(
        two_hot, table_ref[...],
        preferred_element_type=jnp.float32,
        precision=jax.lax.Precision.HIGHEST,
    )                            # (N, E) = token_emb + pos_emb

    # TODO(synk): training-mode stochastic dropout (pltpu.prng_random_bits) not
    # implemented; dropout_rate=0.0 / eval mode is the identity.

    # One-pass LayerNorm over the embedding axis.
    mean = jnp.mean(x, axis=-1, keepdims=True)
    mean_sq = jnp.mean(x * x, axis=-1, keepdims=True)
    var = mean_sq - mean * mean
    inv = jax.lax.rsqrt(var + LN_EPS)        # EUP rsqrt
    out_ref[...] = (x - mean) * inv * gamma_ref[...] + beta_ref[...]


def embedder(tokens, emb_table, gamma, beta):
    """tokens: (B, S) int32; emb_table: stacked (VOCAB+MAX_SEQ, E) f32."""
    B, S = tokens.shape
    E = emb_table.shape[1]
    n = B * S

    tok_ids = tokens.reshape(n, 1).astype(jnp.int32)
    pos_ids = jnp.tile(jnp.arange(S, dtype=jnp.int32), (B,)).reshape(n, 1)

    def full2(shape):
        return pl.BlockSpec(shape, lambda i: (0, 0))

    out = pl.pallas_call(
        embedder_kernel,
        out_shape=jax.ShapeDtypeStruct((n, E), jnp.float32),
        grid=(1,),                              # whole token slab in one step
        in_specs=[
            full2((n, 1)),                      # token ids
            full2((n, 1)),                      # position ids
            full2((TABLE_ROWS, E)),             # stacked embedding tables
            full2((1, E)),                      # LayerNorm gamma
            full2((1, E)),                      # LayerNorm beta
        ],
        out_specs=full2((n, E)),
        compiler_params=pltpu.CompilerParams(
            dimension_semantics=("arbitrary",)),
    )(tok_ids, pos_ids, emb_table, gamma, beta)
    return out.reshape(B, S, E)


def reference_embedder(tokens, tok_table, pos_table, gamma, beta):
    """Plain-JAX reference matching the PyTorch forward (dropout identity)."""
    B, S = tokens.shape
    tok_emb = tok_table[tokens]                          # (B, S, E)
    pos_emb = pos_table[jnp.arange(S)][None, :, :]       # (1, S, E)
    x = tok_emb + pos_emb
    mu = jnp.mean(x, axis=-1, keepdims=True)
    var = jnp.mean((x - mu) ** 2, axis=-1, keepdims=True)
    return (x - mu) / jnp.sqrt(var + LN_EPS) * gamma[0] + beta[0]


if __name__ == "__main__":
    root = jax.random.PRNGKey(0)
    k_tok, k_te, k_pe, k_g, k_b = jax.random.split(root, 5)

    tokens = jax.random.randint(k_tok, (BATCH, SEQ), 0, VOCAB, dtype=jnp.int32)
    tok_table = jax.random.normal(k_te, (VOCAB, EMBED), jnp.float32) * 0.02
    pos_table = jax.random.normal(k_pe, (MAX_SEQ, EMBED), jnp.float32) * 0.02
    gamma = 1.0 + jax.random.normal(k_g, (1, EMBED), jnp.float32) * 0.02
    beta = jax.random.normal(k_b, (1, EMBED), jnp.float32) * 0.02

    # One-time parameter prep: stack both embedding tables so the kernel does a
    # single fused contraction per call.
    emb_table = jnp.concatenate([tok_table, pos_table], axis=0)  # (VOCAB+MAX_SEQ, E)

    out = embedder(tokens, emb_table, gamma, beta)
    out = jax.block_until_ready(out)

    ref = reference_embedder(tokens, tok_table, pos_table, gamma, beta)
    assert out.shape == (BATCH, SEQ, EMBED)
    assert jnp.allclose(out, ref, atol=1e-4, rtol=1e-4), "mismatch vs reference"

    print("KERNEL_OK")
</pallas_src>

<mosaic_0001>
module attributes {stable_mosaic.version = 11 : i64} {
  func.func @embedder_kernel(%arg0: i32, %arg1: memref<16x1xi32, #tpu.memory_space<vmem>>, %arg2: memref<16x1xi32, #tpu.memory_space<vmem>>, %arg3: memref<256x32xf32, #tpu.memory_space<vmem>>, %arg4: memref<1x32xf32, #tpu.memory_space<vmem>>, %arg5: memref<1x32xf32, #tpu.memory_space<vmem>>, %arg6: memref<16x32xf32, #tpu.memory_space<vmem>>) attributes {dimension_semantics = [#tpu.dimension_semantics<arbitrary>], iteration_bounds = array<i64: 1>, scalar_prefetch = 0 : i64, scratch_operands = 0 : i64, tpu.core_type = #tpu.core_type<tc>, window_params = [{pipeline_mode = #tpu.pipeline_mode<synchronous>, transform_indices = @transform_0, window_bounds = array<i64: 16, 1>}, {pipeline_mode = #tpu.pipeline_mode<synchronous>, transform_indices = @transform_1, window_bounds = array<i64: 16, 1>}, {pipeline_mode = #tpu.pipeline_mode<synchronous>, transform_indices = @transform_2, window_bounds = array<i64: 256, 32>}, {pipeline_mode = #tpu.pipeline_mode<synchronous>, transform_indices = @transform_3, window_bounds = array<i64: 1, 32>}, {pipeline_mode = #tpu.pipeline_mode<synchronous>, transform_indices = @transform_4, window_bounds = array<i64: 1, 32>}, {pipeline_mode = #tpu.pipeline_mode<synchronous>, transform_indices = @transform_5, window_bounds = array<i64: 16, 32>}]} {
    %c0 = arith.constant 0 : index
    %c0_0 = arith.constant 0 : index
    %0 = vector.load %arg1[%c0, %c0_0] : memref<16x1xi32, #tpu.memory_space<vmem>>, vector<16x1xi32>
    %c0_1 = arith.constant 0 : index
    %c0_2 = arith.constant 0 : index
    %1 = vector.load %arg2[%c0_1, %c0_2] : memref<16x1xi32, #tpu.memory_space<vmem>>, vector<16x1xi32>
    %2 = tpu.iota {dimensions = array<i32: 1>} : vector<16x256xi32>
    %3 = vector.broadcast %0 : vector<16x1xi32> to vector<16x256xi32>
    %4 = arith.cmpi eq, %2, %3 : vector<16x256xi32>
    %c128_i32 = arith.constant 128 : i32
    %5 = vector.broadcast %c128_i32 : i32 to vector<16x1xi32>
    %6 = arith.addi %5, %1 : vector<16x1xi32>
    %7 = vector.broadcast %6 : vector<16x1xi32> to vector<16x256xi32>
    %8 = arith.cmpi eq, %2, %7 : vector<16x256xi32>
    %9 = arith.ori %4, %8 : vector<16x256xi1>
    %10 = arith.extui %9 : vector<16x256xi1> to vector<16x256xi32>
    %11 = arith.sitofp %10 : vector<16x256xi32> to vector<16x256xf32>
    %c0_3 = arith.constant 0 : index
    %c0_4 = arith.constant 0 : index
    %12 = vector.load %arg3[%c0_3, %c0_4] : memref<256x32xf32, #tpu.memory_space<vmem>>, vector<256x32xf32>
    %cst = arith.constant dense<0.000000e+00> : vector<16x32xf32>
    %13 = tpu.matmul %11, %12, %cst {dimension_numbers = #tpu.dot_dimension_numbers<[1], [0], [0], [1], [0, 0, 1, 1], [], []>, precision = #tpu.contract_precision<fp32>} : vector<16x256xf32>, vector<256x32xf32>, vector<16x32xf32> -> vector<16x32xf32>
    %cst_5 = arith.constant dense<0.000000e+00> : vector<16xf32>
    %14 = vector.multi_reduction <add>, %13, %cst_5 [1] : vector<16x32xf32> to vector<16xf32>
    %15 = vector.shape_cast %14 : vector<16xf32> to vector<16x1xf32>
    %cst_6 = arith.constant 3.200000e+01 : f32
    %16 = vector.broadcast %cst_6 : f32 to vector<16x1xf32>
    %17 = arith.divf %15, %16 : vector<16x1xf32>
    %18 = arith.mulf %13, %13 : vector<16x32xf32>
    %cst_7 = arith.constant dense<0.000000e+00> : vector<16xf32>
    %19 = vector.multi_reduction <add>, %18, %cst_7 [1] : vector<16x32xf32> to vector<16xf32>
    %20 = vector.shape_cast %19 : vector<16xf32> to vector<16x1xf32>
    %cst_8 = arith.constant 3.200000e+01 : f32
    %21 = vector.broadcast %cst_8 : f32 to vector<16x1xf32>
    %22 = arith.divf %20, %21 : vector<16x1xf32>
    %23 = arith.mulf %17, %17 : vector<16x1xf32>
    %24 = arith.subf %22, %23 : vector<16x1xf32>
    %cst_9 = arith.constant 9.99999974E-6 : f32
    %25 = vector.broadcast %cst_9 : f32 to vector<16x1xf32>
    %26 = arith.addf %24, %25 : vector<16x1xf32>
    %27 = math.rsqrt %26 : vector<16x1xf32>
    %28 = vector.broadcast %17 : vector<16x1xf32> to vector<16x32xf32>
    %29 = arith.subf %13, %28 : vector<16x32xf32>
    %30 = vector.broadcast %27 : vector<16x1xf32> to vector<16x32xf32>
    %31 = arith.mulf %29, %30 : vector<16x32xf32>
    %c0_10 = arith.constant 0 : index
    %c0_11 = arith.constant 0 : index
    %32 = vector.load %arg4[%c0_10, %c0_11] : memref<1x32xf32, #tpu.memory_space<vmem>>, vector<1x32xf32>
    %33 = vector.broadcast %32 : vector<1x32xf32> to vector<16x32xf32>
    %34 = arith.mulf %31, %33 : vector<16x32xf32>
    %c0_12 = arith.constant 0 : index
    %c0_13 = arith.constant 0 : index
    %35 = vector.load %arg5[%c0_12, %c0_13] : memref<1x32xf32, #tpu.memory_space<vmem>>, vector<1x32xf32>
    %36 = vector.broadcast %35 : vector<1x32xf32> to vector<16x32xf32>
    %37 = arith.addf %34, %36 : vector<16x32xf32>
    %c0_14 = arith.constant 0 : index
    %c0_15 = arith.constant 0 : index
    %38 = vector.load %arg6[%c0_14, %c0_15] : memref<16x32xf32, #tpu.memory_space<vmem>>, vector<16x32xf32>
    tpu.vector_store %arg6[%c0_14, %c0_15], %37 {strides = array<i32>} : memref<16x32xf32, #tpu.memory_space<vmem>>, vector<16x32xf32>,
    return
  }
  func.func @transform_0(%arg0: i32) -> (i32, i32) {
    %c0_i32 = arith.constant 0 : i32
    %c0_i32_0 = arith.constant 0 : i32
    %c0_i32_1 = arith.constant 0 : i32
    return %c0_i32, %c0_i32_0 : i32, i32
  }
  func.func @transform_1(%arg0: i32) -> (i32, i32) {
    %c0_i32 = arith.constant 0 : i32
    %c0_i32_0 = arith.constant 0 : i32
    %c0_i32_1 = arith.constant 0 : i32
    return %c0_i32, %c0_i32_0 : i32, i32
  }
  func.func @transform_2(%arg0: i32) -> (i32, i32) {
    %c0_i32 = arith.constant 0 : i32
    %c0_i32_0 = arith.constant 0 : i32
    %c0_i32_1 = arith.constant 0 : i32
    return %c0_i32, %c0_i32_0 : i32, i32
  }
  func.func @transform_3(%arg0: i32) -> (i32, i32) {
    %c0_i32 = arith.constant 0 : i32
    %c0_i32_0 = arith.constant 0 : i32
    %c0_i32_1 = arith.constant 0 : i32
    return %c0_i32, %c0_i32_0 : i32, i32
  }
  func.func @transform_4(%arg0: i32) -> (i32, i32) {
    %c0_i32 = arith.constant 0 : i32
    %c0_i32_0 = arith.constant 0 : i32
    %c0_i32_1 = arith.constant 0 : i32
    return %c0_i32, %c0_i32_0 : i32, i32
  }
  func.func @transform_5(%arg0: i32) -> (i32, i32) {
    %c0_i32 = arith.constant 0 : i32
    %c0_i32_0 = arith.constant 0 : i32
    %c0_i32_1 = arith.constant 0 : i32
    return %c0_i32, %c0_i32_0 : i32, i32
  }
}

</mosaic_0001>

<bundles_post_ra>
// kernel: tpu_custom_call.1
= control target key start
LH: loop header
LB: loop body
LE: loop exit
PB: predicated region body
PF: predicated region fallthrough
CT: control target
= control target key end

     0   :  { %v985_v3 = vmov 0   ;;  %s1690_s0 = inlined_call_operand.vmem [shape: s32[16,1], index: 0, kind: input, shape index: {}]   ;;  %s1691_s1 = inlined_call_operand.vmem [shape: s32[16,1], index: 1, kind: input, shape index: {}]   ;;  %s1692_s2 = inlined_call_operand.vmem [shape: f32[256,32], index: 2, kind: input, shape index: {}]   ;;  %s1693_s3 = inlined_call_operand.vmem [shape: f32[1,32], index: 3, kind: input, shape index: {}]   ;;  %s1694_s4 = inlined_call_operand.vmem [shape: f32[1,32], index: 4, kind: input, shape index: {}]   ;;  %s1695_s5 = inlined_call_operand.hbm [shape: f32[16,32], index: 5, kind: output, shape index: {}]  }
   0x1   :  { %v22_v0 = vld [vmem:[%s1690_s0 + $0x8] sm:$0xff]  ;;  %v21_v1 = vld [vmem:[%s1690_s0] sm:$0xff]  ;;  %950 = vset.pattern.permute.xlu1 %v985_v3  ;;  %949 = vset.pattern.permute.xlu0 %v985_v3  ;;  %v77_v5 = vld [vmem:[%s1692_s2 + $0x78] sm:$0xff] }
   0x2   :  { %v24_v2 = vld [vmem:[%s1691_s1 + $0x8] sm:$0xff]  ;;  %v23_v4 = vld [vmem:[%s1691_s1] sm:$0xff]  ;;  %v76_v6 = vld [vmem:[%s1692_s2 + $0x70] sm:$0xff]  ;;  %32 = vperm.xlu1 %950, %v22_v0   ;;  %29 = vperm.xlu0 %949, %v21_v1   ;;  %v1040_v8 = vand.u32 4294901760, %v77_v5 }
   0x3   :  { %v39_v7 = vadd.s32 128, %v24_v2  ;;  %v1042_v9 = vand.u32 4294901760, %v76_v6  ;;  %v75_v10 = vld [vmem:[%s1692_s2 + $0x68] sm:$0xff]  ;;  %v74_v11 = vld [vmem:[%s1692_s2 + $0x60] sm:$0xff]  ;;  %v73_v12 = vld [vmem:[%s1692_s2 + $0x58] sm:$0xff]  ;;  %v38_v27 = vadd.s32 128, %v23_v4 }
   0x4   :  { %v1053_v13 = vand.u32 4294901760, %v75_v10  ;;  %v1055_v14 = vand.u32 4294901760, %v74_v11  ;;  %v1057_v15 = vand.u32 4294901760, %v73_v12  ;;  %v72_v16 = vld [vmem:[%s1692_s2 + $0x50] sm:$0xff]  ;;  %v71_v17 = vld [vmem:[%s1692_s2 + $0x48] sm:$0xff]  ;;  %v70_v18 = vld [vmem:[%s1692_s2 + $0x40] sm:$0xff]  ;;  %v1069_v19 = vsub.f32 %v77_v5, %v1040_v8  ;;  %308 = vmatpush.msra.mxu3 %v1040_v8  ;;  %95 = vmatpush.msra.mxu0 %v1040_v8 }
   0x5   :  { %v1072_v20 = vsub.f32 %v76_v6, %v1042_v9  ;;  %v1076_v21 = vand.u32 4294901760, %v72_v16  ;;  %v1078_v22 = vand.u32 4294901760, %v71_v17  ;;  %v1089_v26 = vand.u32 4294901760, %v70_v18 }
   0x6   :  { %v1081_v23 = vsub.f32 %v75_v10, %v1053_v13  ;;  %v1084_v24 = vsub.f32 %v74_v11, %v1055_v14  ;;  %v1087_v25 = vsub.f32 %v73_v12, %v1057_v15  ;;  %v1714_v28 = vand.u32 4294901760, %v1069_v19  ;;  %250 = vmatpush.msra.mxu2 %v1069_v19  ;;  %310 = vmatpush.msra.mxu3 %v1042_v9 }
   0x7   :  { %v1709_v29 = vand.u32 4294901760, %v1072_v20  ;;  %v1096_v30 = vsub.f32 %v72_v16, %v1076_v21  ;;  %97 = vmatpush.msra.mxu0 %v1042_v9  ;;  %v1102_v33 = vsub.f32 %v71_v17, %v1078_v22 }
   0x8   :  { %v1708_v31 = vand.u32 4294901760, %v1081_v23  ;;  %v1706_v32 = vand.u32 4294901760, %v1084_v24 }
   0x9   :  { %10 = vsyncpa [#allocation3], 0  ;;  %v146_v34 = vsub.f32 %v1069_v19, %v1714_v28  ;;  %v152_v35 = vsub.f32 %v1072_v20, %v1709_v29  ;;  %253 = vmatpush.msra.mxu2 %v1072_v20  ;;  %v1705_v36 = vand.u32 4294901760, %v1087_v25  ;;  %312 = vmatpush.msra.mxu3 %v1053_v13  ;;  %v1703_v38 = vand.u32 4294901760, %v1096_v30  ;;  %v69_v40 = vld [vmem:[%s1692_s2 + $0x38] sm:$0xff]  ;;  %v68_v41 = vld [vmem:[%s1692_s2 + $0x30] sm:$0xff] }
   0xa   :  { %v158_v37 = vsub.f32 %v1081_v23, %v1708_v31  ;;  %99 = vmatpush.msra.mxu0 %v1053_v13  ;;  %v1119_v39 = vsub.f32 %v70_v18, %v1089_v26  ;;  %44 = vperm.xlu1 %950, %v39_v7   ;;  %v164_v44 = vsub.f32 %v1084_v24, %v1706_v32  ;;  %v67_v45 = vld [vmem:[%s1692_s2 + $0x28] sm:$0xff]  ;;  %v1701_v46 = vand.u32 4294901760, %v1102_v33  ;;  %v66_v47 = vld [vmem:[%s1692_s2 + $0x20] sm:$0xff]  ;;  %v65_v52 = vld [vmem:[%s1692_s2 + $0x18] sm:$0xff]  ;;  %s914_s15 = sshll.u32 %s1695_s5, 4  ;;  %s991_s16 = smov 8   ;;  %s915_s15 = int_to_ptr.hbm [resolvable:$true] %s914_s15 }
   0xb   :  { %41 = vperm.xlu0 %949, %v38_v27   ;;  %v147_v42 = vand.u32 4294901760, %v146_v34  ;;  %v153_v43 = vand.u32 4294901760, %v152_v35  ;;  %256 = vmatpush.msra.mxu2 %v1081_v23  ;;  %v170_v49 = vsub.f32 %v1087_v25, %v1705_v36  ;;  %v1143_v50 = vand.u32 4294901760, %v69_v40  ;;  %v64_v60 = vld [vmem:[%s1692_s2 + $0x10] sm:$0xff]  ;;  %v63_v2 = vld [vmem:[%s1692_s2 + $0x8] sm:$0xff]  ;;  %v62_v10 = vld [vmem:[%s1692_s2] sm:$0xff] }
   0xc   :  { %314 = vmatpush.msra.mxu3 %v1055_v14  ;;  %v159_v48 = vand.u32 4294901760, %v158_v37  ;;  %101 = vmatpush.msra.mxu0 %v1055_v14  ;;  %v1145_v51 = vand.u32 4294901760, %v68_v41  ;;  %v176_v53 = vsub.f32 %v1096_v30, %v1703_v38  ;;  %v1700_v54 = vand.u32 4294901760, %v1119_v39  ;;  %v93_v16 = vld [vmem:[%s1692_s2 + $0xf8] sm:$0xff]  ;;  %v92_v17 = vld [vmem:[%s1692_s2 + $0xf0] sm:$0xff]  ;;  %v91_v35 = vld [vmem:[%s1692_s2 + $0xe8] sm:$0xff] }
   0xd   :  { %148 = vmatpush.msra.mxu1 %v147_v42  ;;  %259 = vmatpush.msra.mxu2 %v1084_v24  ;;  %v1156_v55 = vand.u32 4294901760, %v67_v45  ;;  %v165_v56 = vand.u32 4294901760, %v164_v44  ;;  %v1159_v57 = vsub.f32 %v69_v40, %v1143_v50  ;;  %v1165_v59 = vand.u32 4294901760, %v66_v47  ;;  %v90_v37 = vld [vmem:[%s1692_s2 + $0xe0] sm:$0xff] }
   0xe   :  { %316 = vmatpush.msra.mxu3 %v1057_v15  ;;  %103 = vmatpush.msra.mxu0 %v1057_v15  ;;  %v1163_v58 = vsub.f32 %v68_v41, %v1145_v51  ;;  %v1172_v61 = vand.u32 4294901760, %v65_v52  ;;  %v171_v62 = vand.u32 4294901760, %v170_v49  ;;  %v182_v63 = vsub.f32 %v1102_v33, %v1701_v46 }
   0xf   :  { %154 = vmatpush.msra.mxu1 %v153_v43  ;;  %262 = vmatpush.msra.mxu2 %v1087_v25  ;;  %v1699_v0 = vand.u32 4294901760, %v1159_v57  ;;  %v1180_v1 = vsub.f32 %v67_v45, %v1156_v55  ;;  %v188_v3 = vsub.f32 %v1119_v39, %v1700_v54  ;;  %v1190_v4 = vand.u32 4294901760, %v64_v60 }
  0x10   :  { %318 = vmatpush.msra.mxu3 %v1076_v21  ;;  %105 = vmatpush.msra.mxu0 %v1076_v21  ;;  %v177_v5 = vand.u32 4294901760, %v176_v53  ;;  %v1697_v6 = vand.u32 4294901760, %v1163_v58  ;;  %v1195_v7 = vsub.f32 %v66_v47, %v1165_v59  ;;  %v1203_v11 = vsub.f32 %v65_v52, %v1172_v61 }
  0x11   :  { %160 = vmatpush.msra.mxu1 %v159_v48  ;;  %265 = vmatpush.msra.mxu2 %v1096_v30  ;;  %v1205_v12 = vand.u32 4294901760, %v63_v2  ;;  %v183_v18 = vand.u32 4294901760, %v182_v63  ;;  %v194_v27 = vsub.f32 %v1159_v57, %v1699_v0  ;;  %v1696_v34 = vand.u32 4294901760, %v1180_v1  ;;  %v89_v48 = vld [vmem:[%s1692_s2 + $0xd8] sm:$0xff] }
  0x12   :  { %320 = vmatpush.msra.mxu3 %v1078_v22  ;;  %107 = vmatpush.msra.mxu0 %v1078_v22  ;;  %v189_v40 = vand.u32 4294901760, %v188_v3  ;;  %v1227_v41 = vsub.f32 %v64_v60, %v1190_v4  ;;  %v1229_v42 = vand.u32 4294901760, %v62_v10  ;;  %v200_v43 = vsub.f32 %v1163_v58, %v1697_v6 }
  0x13   :  { %166 = vmatpush.msra.mxu1 %v165_v56  ;;  %268 = vmatpush.msra.mxu2 %v1102_v33  ;;  %v1698_v44 = vand.u32 4294901760, %v1195_v7  ;;  %v1236_v45 = vand.u32 4294901760, %v93_v16  ;;  %v1238_v47 = vand.u32 4294901760, %v92_v17  ;;  %v1702_v49 = vand.u32 4294901760, %v1203_v11 }
  0x14   :  { %322 = vmatpush.msra.mxu3 %v1089_v26  ;;  %109 = vmatpush.msra.mxu0 %v1089_v26  ;;  %v1247_v52 = vsub.f32 %v63_v2, %v1205_v12  ;;  %v1249_v53 = vand.u32 4294901760, %v91_v35  ;;  %v1251_v56 = vand.u32 4294901760, %v90_v37  ;;  %v195_v60 = vand.u32 4294901760, %v194_v27  ;;  %v88_v2 = vld [vmem:[%s1692_s2 + $0xd0] sm:$0xff] }
  0x15   :  { %172 = vmatpush.msra.mxu1 %v171_v62  ;;  %271 = vmatpush.msra.mxu2 %v1119_v39  ;;  %v206_v62 = vsub.f32 %v1180_v1, %v1696_v34  ;;  %v1258_v63 = vsub.f32 %v93_v16, %v1236_v45  ;;  %v1261_v3 = vsub.f32 %v92_v17, %v1238_v47  ;;  %v1274_v27 = vand.u32 4294901760, %v89_v48 }
  0x16   :  { %324 = vmatpush.msra.mxu3 %v1143_v50  ;;  %111 = vmatpush.msra.mxu0 %v1143_v50  ;;  %v201_v16 = vand.u32 4294901760, %v200_v43  ;;  %v212_v17 = vsub.f32 %v1195_v7, %v1698_v44  ;;  %v1707_v34 = vand.u32 4294901760, %v1227_v41  ;;  %v1291_v43 = vand.u32 4294901760, %v88_v2 }
  0x17   :  { %178 = vmatpush.msra.mxu1 %v177_v5  ;;  %274 = vmatpush.msra.mxu2 %v1159_v57  ;;  %v1269_v5 = vsub.f32 %v62_v10, %v1229_v42  ;;  %v1704_v6 = vand.u32 4294901760, %v1258_v63  ;;  %v87_v10 = vld [vmem:[%s1692_s2 + $0xc8] sm:$0xff]  ;;  %v207_v44 = vand.u32 4294901760, %v206_v62  ;;  %v218_v0 = vsub.f32 %v1203_v11, %v1702_v49 }
  0x18   :  { %326 = vmatpush.msra.mxu3 %v1145_v51  ;;  %113 = vmatpush.msra.mxu0 %v1145_v51  ;;  %v1711_v54 = vand.u32 4294901760, %v1247_v52  ;;  %v1308_v62 = vsub.f32 %v89_v48, %v1274_v27  ;;  %v1310_v49 = vand.u32 4294901760, %v87_v10  ;;  %v213_v38 = vand.u32 4294901760, %v212_v17 }
  0x19   :  { %184 = vmatpush.msra.mxu1 %v183_v18  ;;  %277 = vmatpush.msra.mxu2 %v1163_v58  ;;  %v1272_v18 = vsub.f32 %v91_v35, %v1249_v53  ;;  %v1710_v35 = vand.u32 4294901760, %v1261_v3  ;;  %v518_v46 = vsub.f32 %v1258_v63, %v1704_v6  ;;  %v224_v6 = vsub.f32 %v1227_v41, %v1707_v34 }
  0x1a   :  { %328 = vmatpush.msra.mxu3 %v1156_v55  ;;  %115 = vmatpush.msra.mxu0 %v1156_v55  ;;  %v1713_v36 = vand.u32 4294901760, %v1269_v5  ;;  %v219_v34 = vand.u32 4294901760, %v218_v0  ;;  %v230_v31 = vsub.f32 %v1247_v52, %v1711_v54  ;;  %vm838_vm12 = vcmask 261120  }
  0x1b   :  { %190 = vmatpush.msra.mxu1 %v189_v40  ;;  %280 = vmatpush.msra.mxu2 %v1180_v1  ;;  %v1289_v40 = vsub.f32 %v90_v37, %v1251_v56  ;;  %v86_v37 = vld [vmem:[%s1692_s2 + $0xc0] sm:$0xff]  ;;  %v524_v48 = vsub.f32 %v1261_v3, %v1710_v35  ;;  %v519_v29 = vand.u32 4294901760, %v518_v46  ;;  %v541_v35 = vand.u32 4294901760, %v1308_v62 }
  0x1c   :  { %330 = vmatpush.msra.mxu3 %v1165_v59  ;;  %117 = vmatpush.msra.mxu0 %v1165_v59  ;;  %v1326_v17 = vand.u32 4294901760, %v86_v37  ;;  %v225_v0 = vand.u32 4294901760, %v224_v6  ;;  %v236_v54 = vsub.f32 %v1269_v5, %v1713_v36  ;;  %v231_v6 = vand.u32 4294901760, %v230_v31 }
  0x1d   :  { %196 = vmatpush.msra.mxu1 %v195_v60  ;;  %283 = vmatpush.msra.mxu2 %v1195_v7  ;;  %v1712_v60 = vand.u32 4294901760, %v1272_v18  ;;  %v1715_v32 = vand.u32 4294901760, %v1289_v40  ;;  %v525_v46 = vand.u32 4294901760, %v524_v48  ;;  %v542_v48 = vsub.f32 %v1308_v62, %v541_v35 }
  0x1e   :  { %332 = vmatpush.msra.mxu3 %v1172_v61  ;;  %119 = vmatpush.msra.mxu0 %v1172_v61 }
  0x1f   :  { %202 = vmatpush.msra.mxu1 %v201_v16  ;;  %286 = vmatpush.msra.mxu2 %v1203_v11  ;;  %v1324_v16 = vsub.f32 %v88_v2, %v1291_v43  ;;  %v530_v2 = vsub.f32 %v1272_v18, %v1712_v60  ;;  %v536_v60 = vsub.f32 %v1289_v40, %v1715_v32  ;;  %v237_v32 = vand.u32 4294901760, %v236_v54 }
  0x20   :  { %334 = vmatpush.msra.mxu3 %v1190_v4  ;;  %121 = vmatpush.msra.mxu0 %v1190_v4  ;;  %v543_v54 = vand.u32 4294901760, %v542_v48 }
  0x21   :  { %208 = vmatpush.msra.mxu1 %v207_v44  ;;  %289 = vmatpush.msra.mxu2 %v1227_v41  ;;  %v1339_v44 = vsub.f32 %v87_v10, %v1310_v49  ;;  %v547_v10 = vand.u32 4294901760, %v1324_v16  ;;  %v531_v36 = vand.u32 4294901760, %v530_v2  ;;  %v1717_v2 = vand.u32 4294901760, %v1072_v20 }
  0x22   :  { %336 = vmatpush.msra.mxu3 %v1205_v12  ;;  %123 = vmatpush.msra.mxu0 %v1205_v12  ;;  %v1718_v20 = vand.u32 4294901760, %v1081_v23  ;;  %v1721_v23 = vand.u32 4294901760, %v1096_v30  ;;  %v1726_v30 = vand.u32 4294901760, %v1180_v1  ;;  %v82_v1 = vld [vmem:[%s1692_s2 + $0xa0] sm:$0xff] }
  0x23   :  { %214 = vmatpush.msra.mxu1 %v213_v38  ;;  %292 = vmatpush.msra.mxu2 %v1247_v52  ;;  %v1352_v38 = vsub.f32 %v86_v37, %v1326_v17  ;;  %v553_v28 = vand.u32 4294901760, %v1339_v44  ;;  %v548_v31 = vsub.f32 %v1324_v16, %v547_v10 }
  0x24   :  { %338 = vmatpush.msra.mxu3 %v1229_v42  ;;  %125 = vmatpush.msra.mxu0 %v1229_v42 }
  0x25   :  { %220 = vmatpush.msra.mxu1 %v219_v34  ;;  %295 = vmatpush.msra.mxu2 %v1269_v5  ;;  %v1716_v34 = vand.u32 4294901760, %v1069_v19  ;;  %v559_v37 = vand.u32 4294901760, %v1352_v38  ;;  %v554_v19 = vsub.f32 %v1339_v44, %v553_v28 }
  0x26   :  { %520 = vmatpush.msrb.mxu3 %v519_v29  ;;  %v537_v29 = vand.u32 4294901760, %v536_v60  ;;  %v549_v60 = vand.u32 4294901760, %v548_v31 }
  0x27   :  { %226 = vmatpush.msra.mxu1 %v225_v0  ;;  %467 = vmatpush.msrb.mxu2 %v1236_v45  ;;  %v560_v0 = vsub.f32 %v1352_v38, %v559_v37 }
  0x28   :  { %526 = vmatpush.msrb.mxu3 %v525_v46  ;;  %355 = vmatpush.msrb.mxu0 %v1716_v34  ;;  %v1720_v46 = vand.u32 4294901760, %v1087_v25  ;;  %v1724_v25 = vand.u32 4294901760, %v1159_v57  ;;  %v83_v57 = vld [vmem:[%s1692_s2 + $0xa8] sm:$0xff] }
  0x29   :  { %232 = vmatpush.msra.mxu1 %v231_v6  ;;  %469 = vmatpush.msrb.mxu2 %v1238_v47 }
  0x2a   :  { %532 = vmatpush.msrb.mxu3 %v531_v36  ;;  %359 = vmatpush.msrb.mxu0 %v1717_v2  ;;  %v555_v36 = vand.u32 4294901760, %v554_v19 }
  0x2b   :  { %238 = vmatpush.msra.mxu1 %v237_v32  ;;  %471 = vmatpush.msrb.mxu2 %v1249_v53  ;;  %v1719_v32 = vand.u32 4294901760, %v1084_v24  ;;  %v1722_v24 = vand.u32 4294901760, %v1102_v33  ;;  %v1730_v33 = vand.u32 4294901760, %v1247_v52 }
  0x2c   :  { %538 = vmatpush.msrb.mxu3 %v537_v29  ;;  %363 = vmatpush.msrb.mxu0 %v1718_v20  ;;  %v79_v20 = vld [vmem:[%s1692_s2 + $0x88] sm:$0xff] }
  0x2d   :  { %426 = vmatpush.msrb.mxu1 %v1040_v8  ;;  %473 = vmatpush.msrb.mxu2 %v1251_v56  ;;  %v561_v8 = vand.u32 4294901760, %v560_v0 }
  0x2e   :  { %544 = vmatpush.msrb.mxu3 %v543_v54  ;;  %367 = vmatpush.msrb.mxu0 %v1719_v32  ;;  %v80_v54 = vld [vmem:[%s1692_s2 + $0x90] sm:$0xff] }
  0x2f   :  { %428 = vmatpush.msrb.mxu1 %v1042_v9  ;;  %475 = vmatpush.msrb.mxu2 %v1274_v27  ;;  %v85_v9 = vld [vmem:[%s1692_s2 + $0xb8] sm:$0xff] }
  0x30   :  { %550 = vmatpush.msrb.mxu3 %v549_v60  ;;  %371 = vmatpush.msrb.mxu0 %v1720_v46  ;;  %v1487_v60 = vand.u32 4294901760, %v80_v54 }
  0x31   :  { %430 = vmatpush.msrb.mxu1 %v1053_v13  ;;  %477 = vmatpush.msrb.mxu2 %v1291_v43  ;;  %v1398_v13 = vand.u32 4294901760, %v85_v9 }
  0x32   :  { %556 = vmatpush.msrb.mxu3 %v555_v36  ;;  %375 = vmatpush.msrb.mxu0 %v1721_v23  ;;  %v1500_v46 = vsub.f32 %v80_v54, %v1487_v60 }
  0x33   :  { %432 = vmatpush.msrb.mxu1 %v1055_v14  ;;  %479 = vmatpush.msrb.mxu2 %v1310_v49  ;;  %v1723_v14 = vand.u32 4294901760, %v1119_v39  ;;  %v1731_v39 = vand.u32 4294901760, %v1269_v5 }
  0x34   :  { %562 = vmatpush.msrb.mxu3 %v561_v8  ;;  %379 = vmatpush.msrb.mxu0 %v1722_v24  ;;  %v1497_v8 = vand.u32 4294901760, %v79_v20  ;;  %v595_v24 = vand.u32 4294901760, %v1500_v46 }
  0x35   :  { %434 = vmatpush.msrb.mxu1 %v1057_v15  ;;  %481 = vmatpush.msrb.mxu2 %v1326_v17  ;;  %v1725_v15 = vand.u32 4294901760, %v1163_v58 }
  0x36   :  { %383 = vmatpush.msrb.mxu0 %v1723_v14 }
  0x37   :  { %436 = vmatpush.msrb.mxu1 %v1076_v21  ;;  %483 = vmatpush.msrb.mxu2 %v1398_v13  ;;  %v1727_v21 = vand.u32 4294901760, %v1195_v7 }
  0x38   :  { %387 = vmatpush.msrb.mxu0 %v1724_v25  ;;  %v1513_v25 = vsub.f32 %v79_v20, %v1497_v8  ;;  %v986_v20 = vmov 1.0  }
  0x39   :  { %438 = vmatpush.msrb.mxu1 %v1078_v22  ;;  %v1728_v22 = vand.u32 4294901760, %v1203_v11  ;;  %v1458_v11 = vand.u32 4294901760, %v82_v1 }
  0x3a   :  { %391 = vmatpush.msrb.mxu0 %v1725_v15 }
  0x3b   :  { %440 = vmatpush.msrb.mxu1 %v1089_v26  ;;  %v1729_v26 = vand.u32 4294901760, %v1227_v41  ;;  %v81_v41 = vld [vmem:[%s1692_s2 + $0x98] sm:$0xff]  ;;  %v1474_v48 = vsub.f32 %v82_v1, %v1458_v11 }
  0x3c   :  { %395 = vmatpush.msrb.mxu0 %v1726_v30  ;;  %v1471_v6 = vand.u32 4294901760, %v81_v41  ;;  %v596_v30 = vsub.f32 %v1500_v46, %v595_v24 }
  0x3d   :  { %442 = vmatpush.msrb.mxu1 %v1143_v50  ;;  %v84_v50 = vld [vmem:[%s1692_s2 + $0xb0] sm:$0xff]  ;;  %v583_v31 = vand.u32 4294901760, %v1474_v48 }
  0x3e   :  { %399 = vmatpush.msrb.mxu0 %v1727_v21  ;;  %v1490_v0 = vsub.f32 %v81_v41, %v1471_v6  ;;  %v601_v21 = vand.u32 4294901760, %v1513_v25 }
  0x3f   :  { %444 = vmatpush.msrb.mxu1 %v1145_v51  ;;  %v1435_v51 = vand.u32 4294901760, %v84_v50  ;;  %v584_v19 = vsub.f32 %v1474_v48, %v583_v31 }
  0x40   :  { %403 = vmatpush.msrb.mxu0 %v1728_v22  ;;  %v589_v32 = vand.u32 4294901760, %v1490_v0 }
  0x41   :  { %446 = vmatpush.msrb.mxu1 %v1156_v55  ;;  %v1438_v55 = vsub.f32 %v85_v9, %v1398_v13  ;;  %485 = vmatpush.msrb.mxu2 %v1435_v51  ;;  %v585_v36 = vand.u32 4294901760, %v584_v19  ;;  %v78_v9 = vld [vmem:[%s1692_s2 + $0x80] sm:$0xff] }
  0x42   :  { %407 = vmatpush.msrb.mxu0 %v1729_v26  ;;  %v590_v23 = vsub.f32 %v1490_v0, %v589_v32  ;;  %v1510_v14 = vand.u32 4294901760, %v78_v9  ;;  %v597_v26 = vand.u32 4294901760, %v596_v30 }
  0x43   :  { %448 = vmatpush.msrb.mxu1 %v1165_v59  ;;  %v565_v58 = vand.u32 4294901760, %v1438_v55  ;;  %v1445_v59 = vand.u32 4294901760, %v83_v57 }
  0x44   :  { %411 = vmatpush.msrb.mxu0 %v1730_v33  ;;  %v591_v15 = vand.u32 4294901760, %v590_v23  ;;  %v1521_v22 = vsub.f32 %v78_v9, %v1510_v14  ;;  %v602_v33 = vsub.f32 %v1513_v25, %v601_v21 }
  0x45   :  { %450 = vmatpush.msrb.mxu1 %v1172_v61  ;;  %v1448_v61 = vsub.f32 %v84_v50, %v1435_v51  ;;  %487 = vmatpush.msrb.mxu2 %v1445_v59 }
  0x46   :  { %415 = vmatpush.msrb.mxu0 %v1731_v39  ;;  %v607_v39 = vand.u32 4294901760, %v1521_v22  ;;  %v603_v50 = vand.u32 4294901760, %v602_v33  ;;  %v1738_v33 = vand.u32 4294901760, %v1258_v63 }
  0x47   :  { %452 = vmatpush.msrb.mxu1 %v1190_v4  ;;  %v566_v4 = vsub.f32 %v1438_v55, %v565_v58  ;;  %v571_v7 = vand.u32 4294901760, %v1448_v61  ;;  %489 = vmatpush.msrb.mxu2 %v1458_v11 }
  0x49   :  { %454 = vmatpush.msrb.mxu1 %v1205_v12  ;;  %v1461_v12 = vsub.f32 %v83_v57, %v1445_v59  ;;  %v572_v52 = vsub.f32 %v1448_v61, %v571_v7  ;;  %491 = vmatpush.msrb.mxu2 %v1471_v6  ;;  %v608_v57 = vsub.f32 %v1521_v22, %v607_v39 }
  0x4b   :  { %456 = vmatpush.msrb.mxu1 %v1229_v42  ;;  %v567_v42 = vand.u32 4294901760, %v566_v4  ;;  %v577_v5 = vand.u32 4294901760, %v1461_v12  ;;  %v573_v34 = vand.u32 4294901760, %v572_v52  ;;  %493 = vmatpush.msrb.mxu2 %v1487_v60  ;;  %v609_v1 = vand.u32 4294901760, %v608_v57 }
  0x4d   :  { %568 = vmatpush.msrb.mxu3 %v567_v42  ;;  %v578_v29 = vsub.f32 %v1461_v12, %v577_v5  ;;  %495 = vmatpush.msrb.mxu2 %v1497_v8  ;;  %v25_v42 = vlaneseq }
  0x4f   :  { %574 = vmatpush.msrb.mxu3 %v573_v34  ;;  %v579_v2 = vand.u32 4294901760, %v578_v29  ;;  %497 = vmatpush.msrb.mxu2 %v1510_v14  ;;  %v26_v52 = vand.u32 127, %v25_v42 }
  0x51   :  { %580 = vmatpush.msrb.mxu3 %v579_v2  ;;  %v27_v2 = vadd.s32 128, %v26_v52 }
  0x53   :  { %586 = vmatpush.msrb.mxu3 %v585_v36  ;;  %v987_v36 = vmov 0.0  }
  0x55   :  { %592 = vmatpush.msrb.mxu3 %v591_v15 }
  0x57   :  { %598 = vmatpush.msrb.mxu3 %v597_v26 }
  0x59   :  { %604 = vmatpush.msrb.mxu3 %v603_v50 }
  0x5b   :  { %610 = vmatpush.msrb.mxu3 %v609_v1 }
  0x74   :  { %v33_v4 = vpop.permute.xlu1 %32  ;;  %v30_v41 = vpop.permute.xlu0 %29 }
  0x75   :  { %vm36_vm0 = vcmp.eq.s32.totalorder %v26_v52, %v33_v4  ;;  %vm34_vm3 = vcmp.eq.s32.totalorder %v26_v52, %v30_v41  ;;  %vm35_vm7 = vcmp.eq.s32.totalorder %v27_v2, %v30_v41  ;;  %v1739_v41 = vand.u32 4294901760, %v1261_v3 }
  0x76   :  { %vm37_vm9 = vcmp.eq.s32.totalorder %v27_v2, %v33_v4 }
  0x7c   :  { %v45_v34 = vpop.permute.xlu1 %44 }
  0x7d   :  { %v42_v29 = vpop.permute.xlu0 %41  ;;  %vm48_vm1 = vcmp.eq.s32.totalorder %v26_v52, %v45_v34  ;;  %vm49_vm10 = vcmp.eq.s32.totalorder %v27_v2, %v45_v34 }
  0x7e   :  { %vm46_vm2 = vcmp.eq.s32.totalorder %v26_v52, %v42_v29  ;;  %vm1530_vm4 = vmor %vm36_vm0, %vm48_vm1  ;;  %vm47_vm5 = vcmp.eq.s32.totalorder %v27_v2, %v42_v29  ;;  %v1740_v29 = vand.u32 4294901760, %v1272_v18 }
  0x7f   :  { %vm1534_vm6 = vmor %vm34_vm3, %vm46_vm2  ;;  %v928_v30 = vsel %vm1530_vm4, 1.0, %v987_v36 }
  0x80   :  { %930 = vmatmul.msk.f32.vlgmr.msra.gmra.mxu1 %vm1534_vm6, %v986_v20  ;;  %v926_v9 = vsel %vm1534_vm6, 1.0, %v987_v36  ;;  %vm1544_vm8 = vmor %vm35_vm7, %vm47_vm5  ;;  %v135_v1 = vsub.f32 %v928_v30, %v928_v30 }
  0x81   :  { %680 = vmatpush.msra.mxu1 %v1236_v45  ;;  %v127_v23 = vsub.f32 %v926_v9, %v926_v9  ;;  %v927_v50 = vsel %vm1544_vm8, 1.0, %v987_v36  ;;  %vm1573_vm11 = vmor %vm37_vm9, %vm49_vm10 }
  0x82   :  { %v1560_v52 = vsub.f32 %v927_v50, %v927_v50  ;;  %v136_v9 = vand.u32 4294901760, %v135_v1 }
  0x83   :  { %298 = vmatmul.f32.vlgmr.msra.gmra.mxu2 %v127_v23  ;;  %682 = vmatpush.msra.mxu1 %v1238_v47  ;;  %v128_v26 = vand.u32 4294901760, %v127_v23 }
  0x84   :  { %727 = vmatpush.msra.mxu2 %v1738_v33 }
  0x85   :  { %342 = vmatmul.f32.vlgmr.msra.gmra.mxu3 %v128_v26  ;;  %684 = vmatpush.msra.mxu1 %v1249_v53  ;;  %v129_v57 = vsub.f32 %v127_v23, %v128_v26 }
  0x86   :  { %731 = vmatpush.msra.mxu2 %v1739_v41  ;;  %798 = vmatpush.msra.mxu3 %v1236_v45  ;;  %v1741_v45 = vand.u32 4294901760, %v1289_v40 }
  0x87   :  { %686 = vmatpush.msra.mxu1 %v1251_v56  ;;  %v130_v42 = vand.u32 4294901760, %v129_v57 }
  0x88   :  { %931 = vmatmul.msk.f32.gmra.mxu1 %vm1530_vm4, %v986_v20  ;;  %735 = vmatpush.msra.mxu2 %v1740_v29 }
  0x89   :  { %800 = vmatpush.msra.mxu3 %v1238_v47  ;;  %131 = vmatmul.f32.vlgmr.msra.gmra.mxu0 %v130_v42  ;;  %v500_v47 = vand.u32 4294901760, %v1560_v52 }
  0x8a   :  { %688 = vmatpush.msra.mxu1 %v1274_v27  ;;  %622 = vmatpush.msra.mxu0 %v1258_v63  ;;  %v137_v63 = vsub.f32 %v135_v1, %v136_v9 }
  0x8b   :  { %739 = vmatpush.msra.mxu2 %v1741_v45  ;;  %802 = vmatpush.msra.mxu3 %v1249_v53  ;;  %v929_v53 = vsel %vm1573_vm11, 1.0, %v987_v36  ;;  %v988_v45 = vmov 32.0  }
  0x8c   :  { %303 = vmatmul.f32.gmra.mxu2 %v135_v1  ;;  %690 = vmatpush.msra.mxu1 %v1291_v43  ;;  %953 = vrcp.f32 %v988_v45 }
  0x8d   :  { %625 = vmatpush.msra.mxu0 %v1261_v3  ;;  %743 = vmatpush.msra.mxu2 %v541_v35  ;;  %v501_v3 = vsub.f32 %v1560_v52, %v500_v47 }
  0x8e   :  { %804 = vmatpush.msra.mxu3 %v1251_v56  ;;  %692 = vmatpush.msra.mxu1 %v1310_v49  ;;  %v138_v56 = vand.u32 4294901760, %v137_v63 }
  0x8f   :  { %348 = vmatmul.f32.gmra.mxu3 %v136_v9  ;;  %628 = vmatpush.msra.mxu0 %v1272_v18  ;;  %v507_v18 = vsub.f32 %v929_v53, %v929_v53 }
  0x90   :  { %747 = vmatpush.msra.mxu2 %v547_v10  ;;  %806 = vmatpush.msra.mxu3 %v1274_v27  ;;  %v502_v27 = vand.u32 4294901760, %v501_v3 }
  0x91   :  { %694 = vmatpush.msra.mxu1 %v1326_v17  ;;  %631 = vmatpush.msra.mxu0 %v1289_v40  ;;  %v508_v35 = vand.u32 4294901760, %v507_v18 }
  0x92   :  { %934 = vmatmul.msk.f32.vlgmr.msrb.gmra.mxu1 %vm1534_vm6, %v986_v20  ;;  %751 = vmatpush.msra.mxu2 %v553_v28  ;;  %v954_v23 = vpop.eup %953 }
  0x93   :  { %808 = vmatpush.msra.mxu3 %v1291_v43  ;;  %139 = vmatmul.f32.gmra.mxu0 %v138_v56  ;;  %v509_v28 = vsub.f32 %v507_v18, %v508_v35  ;;  %vm850_vm13 = vweird.f32 %v954_v23 }
  0x94   :  { %696 = vmatpush.msra.mxu1 %v1398_v13  ;;  %634 = vmatpush.msra.mxu0 %v1308_v62 }
  0x95   :  { %755 = vmatpush.msra.mxu2 %v559_v37  ;;  %810 = vmatpush.msra.mxu3 %v1310_v49  ;;  %v510_v49 = vand.u32 4294901760, %v509_v28 }
  0x96   :  { %503 = vmatmul.f32.vlgmr.msrb.gmra.mxu2 %v502_v27  ;;  %698 = vmatpush.msra.mxu1 %v1435_v51 }
  0x97   :  { %637 = vmatpush.msra.mxu0 %v1324_v16  ;;  %759 = vmatpush.msra.mxu2 %v565_v58 }
  0x98   :  { %812 = vmatpush.msra.mxu3 %v1326_v17  ;;  %700 = vmatpush.msra.mxu1 %v1445_v59 }
  0x99   :  { %936 = vmatmul.msk.f32.vlgmr.msrb.gmra.mxu3 %vm1544_vm8, %v986_v20  ;;  %640 = vmatpush.msra.mxu0 %v1339_v44 }
  0x9a   :  { %763 = vmatpush.msra.mxu2 %v571_v7  ;;  %814 = vmatpush.msra.mxu3 %v1398_v13 }
  0x9b   :  { %702 = vmatpush.msra.mxu1 %v1458_v11  ;;  %643 = vmatpush.msra.mxu0 %v1352_v38 }
  0x9c   :  { %935 = vmatmul.msk.f32.gmra.mxu1 %vm1530_vm4, %v986_v20  ;;  %767 = vmatpush.msra.mxu2 %v577_v5 }
  0x9d   :  { %816 = vmatpush.msra.mxu3 %v1435_v51  ;;  %932 = vmatmul.msk.f32.vlgmr.msrb.gmra.mxu0 %vm1534_vm6, %v986_v20 }
  0x9e   :  { %704 = vmatpush.msra.mxu1 %v1471_v6  ;;  %646 = vmatpush.msra.mxu0 %v1438_v55 }
  0x9f   :  { %771 = vmatpush.msra.mxu2 %v583_v31  ;;  %818 = vmatpush.msra.mxu3 %v1445_v59 }
  0xa0   :  { %511 = vmatmul.f32.gmra.mxu2 %v510_v49  ;;  %706 = vmatpush.msra.mxu1 %v1487_v60 }
  0xa1   :  { %649 = vmatpush.msra.mxu0 %v1448_v61  ;;  %775 = vmatpush.msra.mxu2 %v589_v32 }
  0xa2   :  { %820 = vmatpush.msra.mxu3 %v1458_v11  ;;  %708 = vmatpush.msra.mxu1 %v1497_v8 }
  0xa3   :  { %937 = vmatmul.msk.f32.gmra.mxu3 %vm1573_vm11, %v986_v20  ;;  %652 = vmatpush.msra.mxu0 %v1461_v12 }
  0xa4   :  { %779 = vmatpush.msra.mxu2 %v595_v24  ;;  %822 = vmatpush.msra.mxu3 %v1471_v6 }
  0xa5   :  { %710 = vmatpush.msra.mxu1 %v1510_v14  ;;  %655 = vmatpush.msra.mxu0 %v1474_v48 }
  0xa6   :  { %714 = vmatmul.f32.vlgmr.msra.gmra.mxu1 %v500_v47  ;;  %783 = vmatpush.msra.mxu2 %v601_v21  ;;  %v846_v47 = vmul.f32 32.0, %v954_v23 }
  0xa7   :  { %824 = vmatpush.msra.mxu3 %v1487_v60  ;;  %933 = vmatmul.msk.f32.gmra.mxu0 %vm1530_vm4, %v986_v20 }
  0xa8   :  { %658 = vmatpush.msra.mxu0 %v1490_v0  ;;  %787 = vmatpush.msra.mxu2 %v607_v39  ;;  %v847_v63 = vsub.f32 1.0, %v846_v47 }
  0xa9   :  { %826 = vmatpush.msra.mxu3 %v1497_v8  ;;  %938 = vmatmul.msk.f32.vlgmr.msra.gmra.mxu2 %vm1544_vm8, %v986_v20 }
  0xaa   :  { %661 = vmatpush.msra.mxu0 %v1500_v46  ;;  %v848_v53 = vmul.f32 %v954_v23, %v847_v63 }
  0xab   :  { %828 = vmatpush.msra.mxu3 %v1510_v14 }
  0xac   :  { %940 = vmatmul.msk.f32.vlgmr.msra.gmra.mxu3 %vm1544_vm8, %v986_v20  ;;  %664 = vmatpush.msra.mxu0 %v1513_v25  ;;  %v849_v3 = vadd.f32 %v954_v23, %v848_v53 }
  0xae   :  { %667 = vmatpush.msra.mxu0 %v1521_v22  ;;  %720 = vmatmul.f32.gmra.mxu1 %v508_v35  ;;  %v851_v56 = vsel %vm850_vm13, %v954_v23, %v849_v3 }
  0xaf   :  { %670 = vmatmul.f32.vlgmr.msra.gmra.mxu0 %v1560_v52 }
  0xb1   :  { %939 = vmatmul.msk.f32.gmra.mxu2 %vm1573_vm11, %v986_v20 }
  0xb4   :  { %941 = vmatmul.msk.f32.gmra.mxu3 %vm1573_vm11, %v986_v20 }
  0xb7   :  { %675 = vmatmul.f32.gmra.mxu0 %v507_v18 }
  0xfd   :  { %v241_v40 = vpop.f32.mrf.mxu1 }
 0x105   :  { %v245_v17 = vpop.f32.mrf.mxu1 }
 0x106   :  { %v132_v43 = vpop.f32.mrf.mxu0  ;;  %v299_v62 = vpop.f32.mrf.mxu2 }
 0x107   :  { %v242_v37 = vadd.f32 %v241_v40, %v132_v43 }
 0x108   :  { %v343_v16 = vpop.f32.mrf.mxu3 }
 0x109   :  { %v300_v51 = vadd.f32 %v299_v62, %v242_v37 }
 0x10b   :  { %v344_v61 = vadd.f32 %v343_v16, %v300_v51 }
 0x10f   :  { %v304_v10 = vpop.f32.mrf.mxu2  ;;  %v459_v13 = vpop.f32.mrf.mxu1 }
 0x110   :  { %v140_v44 = vpop.f32.mrf.mxu0 }
 0x111   :  { %v246_v7 = vadd.f32 %v245_v17, %v140_v44 }
 0x112   :  { %v349_v38 = vpop.f32.mrf.mxu3 }
 0x113   :  { %v305_v12 = vadd.f32 %v304_v10, %v246_v7 }
 0x115   :  { %v350_v60 = vadd.f32 %v349_v38, %v305_v12 }
 0x119   :  { %v504_v58 = vpop.f32.mrf.mxu2  ;;  %v463_v5 = vpop.f32.mrf.mxu1 }
 0x11a   :  { %v418_v55 = vpop.f32.mrf.mxu0 }
 0x11b   :  { %v419_v11 = vadd.f32 %v418_v55, %v344_v61 }
 0x11c   :  { %v613_v59 = vpop.f32.mrf.mxu3 }
 0x11d   :  { %v460_v6 = vadd.f32 %v459_v13, %v419_v11 }
 0x11f   :  { %v505_v32 = vadd.f32 %v504_v58, %v460_v6 }
 0x121   :  { %v614_v46 = vadd.f32 %v613_v59, %v505_v32 }
 0x123   :  { %v512_v31 = vpop.f32.mrf.mxu2  ;;  %v715_v14 = vpop.f32.mrf.mxu1 }
 0x124   :  { %v422_v48 = vpop.f32.mrf.mxu0 }
 0x125   :  { %v423_v8 = vadd.f32 %v422_v48, %v350_v60  ;;  %v952_v60 = vld [vmem:[%s1694_s4] ss:$0 sm:$0xff]  ;;  %s990_s4 = smov 128  }
 0x126   :  { %v617_v0 = vpop.f32.mrf.mxu3 }
 0x127   :  { %v464_v24 = vadd.f32 %v463_v5, %v423_v8  ;;  %v951_v5 = vld [vmem:[%s1693_s3] ss:$0 sm:$0xff]  ;;  %s989_s3 = smov [#allocation2]  }
 0x128   :  { %s912_s12 = sshll.u32 %s989_s3, 4  ;;  %s913_s12 = int_to_ptr.vmem [resolvable:$true] %s912_s12 }
 0x129   :  { %v513_v39 = vadd.f32 %v512_v31, %v464_v24 }
 0x12b   :  { %v618_v54 = vadd.f32 %v617_v0, %v513_v39  ;;  %v721_v26 = vpop.f32.mrf.mxu1 }
 0x12c   :  { %v671_v25 = vpop.f32.mrf.mxu0  ;;  %v790_v22 = vpop.f32.mrf.mxu2 }
 0x12d   :  { %v672_v21 = vadd.f32 %v671_v25, %v614_v46 }
 0x12f   :  { %v716_v4 = vadd.f32 %v715_v14, %v672_v21  ;;  %v831_v34 = vpop.f32.mrf.mxu3 }
 0x131   :  { %v791_v2 = vadd.f32 %v790_v22, %v716_v4 }
 0x133   :  { %v832_v19 = vadd.f32 %v831_v34, %v791_v2 }
 0x134   :  { %v676_v20 = vpop.f32.mrf.mxu0  ;;  %v794_v57 = vpop.f32.mrf.mxu2 }
 0x135   :  { %v677_v36 = vadd.f32 %v676_v20, %v618_v54  ;;  %v839_v15 = vsel %vm838_vm12, %v832_v19, 0.0  ;;  %v854_v30 = vmul.f32 %v832_v19, %v832_v19 }
 0x136   :  { %840 = vadd.xlane.f32.xlu2 %v839_v15 }
 0x137   :  { %v722_v33 = vadd.f32 %v721_v26, %v677_v36  ;;  %v856_v50 = vsel %vm838_vm12, %v854_v30, 0.0  ;;  %v835_v41 = vpop.f32.mrf.mxu3 }
 0x138   :  { %857 = vadd.xlane.f32.xlu0 %v856_v50 }
 0x139   :  { %v795_v1 = vadd.f32 %v794_v57, %v722_v33 }
 0x13b   :  { %v836_v42 = vadd.f32 %v835_v41, %v795_v1 }
 0x13d   :  { %v842_v52 = vsel %vm838_vm12, %v836_v42, 0.0  ;;  %v855_v29 = vmul.f32 %v836_v42, %v836_v42 }
 0x13e   :  { %843 = vadd.xlane.f32.xlu2 %v842_v52 }
 0x13f   :  { %v859_v9 = vsel %vm838_vm12, %v855_v29, 0.0 }
 0x140   :  { %860 = vadd.xlane.f32.xlu1 %v859_v9 }
 0x1a9   :  { %v841_v18 = vpop.xlane.xlu2 %840 }
 0x1aa   :  { %v852_v27 = vmul.f32 %v851_v56, %v841_v18 }
 0x1ab   :  { %v858_v35 = vpop.xlane.xlu0 %857 }
 0x1ac   :  { %v864_v28 = vmul.f32 %v852_v27, %v852_v27  ;;  %v862_v49 = vmul.f32 %v858_v35, %v851_v56  ;;  %v890_v12 = vsub.f32 %v832_v19, %v852_v27 }
 0x1ae   :  { %v866_v40 = vsub.f32 %v862_v49, %v864_v28 }
 0x1b0   :  { %v868_v43 = vadd.f32 1e-05, %v866_v40 }
 0x1b1   :  { %v844_v62 = vpop.xlane.xlu2 %843 }
 0x1b2   :  { %955 = vrsqrt.f32 %v868_v43  ;;  %v853_v16 = vmul.f32 %v851_v56, %v844_v62  ;;  %vm876_vm15 = vweird.f32 %v868_v43 }
 0x1b3   :  { %v861_v17 = vpop.xlane.xlu1 %860 }
 0x1b4   :  { %v865_v44 = vmul.f32 %v853_v16, %v853_v16  ;;  %v863_v10 = vmul.f32 %v861_v17, %v851_v56  ;;  %v891_v14 = vsub.f32 %v836_v42, %v853_v16 }
 0x1b6   :  { %v867_v38 = vsub.f32 %v863_v10, %v865_v44 }
 0x1b8   :  { %v956_v37 = vpop.eup %955  ;;  %v869_v13 = vadd.f32 1e-05, %v867_v38 }
 0x1b9   :  { %v871_v51 = vmul.f32 %v956_v37, %v868_v43  ;;  %vm877_vm14 = vweird.f32 %v956_v37 }
 0x1ba   :  { %957 = vrsqrt.f32 %v869_v13  ;;  %vm878_vm0 = vmor %vm876_vm15, %vm877_vm14  ;;  %vm886_vm2 = vweird.f32 %v869_v13 }
 0x1bb   :  { %v872_v55 = vmul.f32 %v956_v37, %v871_v51 }
 0x1bd   :  { %v873_v58 = vmul.f32 0.5, %v872_v55 }
 0x1bf   :  { %v874_v59 = vsub.f32 1.5, %v873_v58 }
 0x1c0   :  { %v958_v61 = vpop.eup %957 }
 0x1c1   :  { %v875_v7 = vmul.f32 %v956_v37, %v874_v59  ;;  %v881_v11 = vmul.f32 %v958_v61, %v869_v13  ;;  %vm887_vm1 = vweird.f32 %v958_v61 }
 0x1c2   :  { %vm888_vm3 = vmor %vm886_vm2, %vm887_vm1 }
 0x1c3   :  { %v879_v6 = vsel %vm878_vm0, %v956_v37, %v875_v7  ;;  %v882_v48 = vmul.f32 %v958_v61, %v881_v11 }
 0x1c4   :  { %v892_v31 = vmul.f32 %v890_v12, %v879_v6 }
 0x1c5   :  { %v883_v0 = vmul.f32 0.5, %v882_v48 }
 0x1c6   :  { %v898_v32 = vmul.f32 %v951_v5, %v892_v31 }
 0x1c7   :  { %v884_v8 = vsub.f32 1.5, %v883_v0 }
 0x1c8   :  { %v904_v46 = vadd.f32 %v952_v60, %v898_v32 }
 0x1c9   :  { %v885_v24 = vmul.f32 %v958_v61, %v884_v8 }
 0x1ca   :  { %906 = vst.msk [vmem:[#allocation2] sm:$0xff] %vm838_vm12, %v904_v46 }
 0x1cb   :  { %v889_v25 = vsel %vm888_vm3, %v958_v61, %v885_v24 }
 0x1cc   :  { %v893_v21 = vmul.f32 %v891_v14, %v889_v25 }
 0x1ce   :  { %v899_v22 = vmul.f32 %v951_v5, %v893_v21 }
 0x1d0   :  { %v905_v39 = vadd.f32 %v952_v60, %v899_v22 }
 0x1d2   :  { %907 = vst.msk [vmem:[#allocation2 + $0x8] sm:$0xff] %vm838_vm12, %v905_v39 }
 0x1d3   :  { %920 = dma.vmem_to_hbm [thread:$0]  %s913_s12, 256, %s915_s15, [#allocation3], %s990_s4, %s990_s4, %s991_s16  }
 0x1d4   :  { %983 = dma.done.wait [#allocation3], 256  }
 0x1d5   :  { %984 = vsyncadd [#allocation3], 4294967040 }
 0x1d6   :  { %925 = vsyncpa [#allocation3], 1 }

</bundles_post_ra>
